<compile_context>
chip_gen: v5e
topology: v5e:2x2
jax: 0.10.0
libtpu: 0.0.40
codegen_flags: <defaults>
</compile_context>

<pallas_src>
import functools
import math

import jax
import jax.numpy as jnp
from jax import lax
from jax.experimental import pallas as pl
from jax.experimental.pallas import tpu as pltpu

_NEG_BIG = -3.0e38               # finite stand-in for -inf (avoids inf-inf NaNs)
_VMEM_TILE_BUDGET = 40 << 20     # target bytes for feature blocks + f32 logits temps


def _ceil_to(x, m):
    return ((x + m - 1) // m) * m


def _block_cost_bytes(tm, tn, d):
    # hi+lo bf16 feature blocks, double-buffered (2B * 2 * 2 = 8) + f32 logits temps.
    return 8 * (tm + tn) * d + 16 * tm * tn


def _select_tiles(m, d):
    """Pick (tm, tn, m_pad): anchor-row tile, contrast-column tile, padded M."""
    m8 = _ceil_to(m, 8)
    # Small/medium M: a single pass over the contrast axis (tn == m_pad) with at
    # least two row tiles so both v7x TensorCores get work.  Capped by the VMEM
    # block budget so large-D cases fall through to the streaming path.
    if m8 <= 1024:
        m_pad = _ceil_to(m, 16) if m8 >= 16 else m8
        tm = min(m_pad // 2, 256) if m_pad >= 16 else m_pad
        while m_pad % tm:        # keep tm a multiple of 8 that divides m_pad
            tm -= 8
        if _block_cost_bytes(tm, m_pad, d) <= _VMEM_TILE_BUDGET:
            return tm, m_pad, m_pad
    # Large M (or large D): flash-style streaming of the contrast axis.  Big tiles
    # amortize the ~0.35us per-grid-step overhead and cut contrast re-streaming.
    for tm, tn in ((512, 512), (256, 512), (256, 256), (128, 256), (128, 128),
                   (64, 128), (32, 128), (16, 128), (8, 128)):
        if _block_cost_bytes(tm, tn, d) <= _VMEM_TILE_BUDGET:
            return tm, tn, _ceil_to(m, tn)
    return 8, 128, _ceil_to(m, 128)      # pathologically large D


def _supcon_kernel(*refs, m_total, m_pad, tm, tn, mxu_passes):
    *in_refs, loss_ref, coef_ref, m_acc, l_acc, p_acc, c_acc = refs
    if mxu_passes >= 2:
        a_hi_ref, a_lo_ref, c_hi_ref, c_lo_ref, sid_row_ref, sid_col_ref = in_refs
    else:
        a_hi_ref, c_hi_ref, sid_row_ref, sid_col_ref = in_refs
        a_lo_ref = c_lo_ref = None

    i = pl.program_id(0)            # anchor-row tile
    j = pl.program_id(1)            # contrast-column tile (reduction axis)
    n_col_tiles = m_pad // tn       # static Python int
    last_j = n_col_tiles - 1

    def _init():
        m_acc[...] = jnp.full(m_acc.shape, _NEG_BIG, jnp.float32)
        l_acc[...] = jnp.zeros_like(l_acc)
        p_acc[...] = jnp.zeros_like(p_acc)
        c_acc[...] = jnp.zeros_like(c_acc)

    if n_col_tiles == 1:
        _init()
    else:
        pl.when(j == 0)(_init)

    # Fused similarity tile (temperature already folded into the features):
    # (tm, D) x (tn, D)^T -> (tm, tn) f32, in up to 3 DEFAULT-precision bf16 passes.
    dn = (((1,), (1,)), ((), ()))
    s = lax.dot_general(a_hi_ref[...], c_hi_ref[...], dn,
                        preferred_element_type=jnp.float32)
    if mxu_passes >= 2:
        s = s + lax.dot_general(a_hi_ref[...], c_lo_ref[...], dn,
                                preferred_element_type=jnp.float32)
    if mxu_passes >= 3:
        s = s + lax.dot_general(a_lo_ref[...], c_hi_ref[...], dn,
                                preferred_element_type=jnp.float32)

    # Mask padded columns, but only on the last column tile (and only when padding
    # exists at all) -- interior tiles stay mask-free.
    if m_pad > m_total:
        def _mask_pad(x):
            col = j * tn + lax.broadcasted_iota(jnp.int32, (1, tn), 1)
            return jnp.where(col < m_total, x, _NEG_BIG)
        if n_col_tiles == 1:
            s = _mask_pad(s)
        else:
            s = lax.cond(j == last_j, _mask_pad, lambda x: x, s)

    m_prev = m_acc[...]

    def _diag_tile(s):
        # This tile's rows intersect its columns: drop the self-logit.
        row = i * tm + lax.broadcasted_iota(jnp.int32, (tm, tn), 0)
        col = j * tn + lax.broadcasted_iota(jnp.int32, (tm, tn), 1)
        not_self = row != col
        pos = (sid_row_ref[...] == sid_col_ref[...]) & not_self
        m_new = jnp.maximum(m_prev, jnp.max(s, axis=1, keepdims=True))
        e = jnp.exp(jnp.where(not_self, s, _NEG_BIG) - m_new)
        return (m_new,
                jnp.sum(e, axis=1, keepdims=True),
                jnp.sum(jnp.where(pos, s, 0.0), axis=1, keepdims=True),
                jnp.sum(pos.astype(jnp.float32), axis=1, keepdims=True))

    def _plain_tile(s):
        # No diagonal and no padded columns in this tile: no masking work at all.
        pos = sid_row_ref[...] == sid_col_ref[...]
        m_new = jnp.maximum(m_prev, jnp.max(s, axis=1, keepdims=True))
        e = jnp.exp(s - m_new)
        return (m_new,
                jnp.sum(e, axis=1, keepdims=True),
                jnp.sum(jnp.where(pos, s, 0.0), axis=1, keepdims=True),
                jnp.sum(pos.astype(jnp.float32), axis=1, keepdims=True))

    if n_col_tiles == 1:
        m_new, e_sum, p_add, c_add = _diag_tile(s)
    else:
        has_diag = (i * tm < (j + 1) * tn) & (j * tn < (i + 1) * tm)
        m_new, e_sum, p_add, c_add = lax.cond(has_diag, _diag_tile, _plain_tile, s)

    # Online (flash-style) LSE update; positive sum/count are linear -> no rescale.
    alpha = jnp.exp(m_prev - m_new)
    l_acc[...] = alpha * l_acc[...] + e_sum
    p_acc[...] = p_acc[...] + p_add
    c_acc[...] = c_acc[...] + c_add
    m_acc[...] = m_new

    def _epilogue():
        c = c_acc[...]
        # Guard rows with no positives (and padded rows) against 0/0.
        mean_pos = jnp.where(c > 0.0, p_acc[...] / jnp.maximum(c, 1.0), 0.0)
        loss = jnp.log(l_acc[...]) + m_acc[...] - mean_pos
        loss_ref[...] = loss
        coef_ref[...] = jnp.exp(0.1 * loss)

    if n_col_tiles == 1:
        _epilogue()
    else:
        pl.when(j == last_j)(_epilogue)


def boosted_loss(features, labels=None, temperature=0.07, mxu_passes=3):
    """Pallas forward of BoostedLoss (contrast_mode='all').

    features: (N, V, ...) array; labels: optional (N,) integer array.
    Returns (loss, coef), each of shape (V, N), matching the PyTorch module.
    mxu_passes in {1, 2, 3}: bf16 hi/lo contraction passes (3 ~ Precision.HIGH;
    1 or 2 trade accuracy for MXU work / feature DMA -- mainly a v5e knob).
    """
    # TODO(synk): contrast_mode='one' and an explicit (bsz, bsz) float `mask`
    # argument are not implemented; only labels=None (SimCLR) / labels (SupCon).
    if features.ndim < 3:
        raise ValueError("`features` needs to be [bsz, n_views, ...]")
    n, v = features.shape[0], features.shape[1]
    feats = features.reshape(n, v, -1)
    d = feats.shape[-1]
    m = n * v

    # Sample-major flattening (row r = sample r//V, view r%V): a pure reshape, no
    # HBM transpose; the torch view-major order is restored on the M output scalars.
    flat = feats.reshape(m, d).astype(jnp.float32)
    # Fold the temperature into the features: (x/sqrt(T)) . (y/sqrt(T)) == x.y / T.
    flat = flat * jnp.float32(1.0 / math.sqrt(float(temperature)))

    tm, tn, m_pad = _select_tiles(m, d)
    if m_pad > m:
        flat = jnp.pad(flat, ((0, m_pad - m), (0, 0)))

    # bf16 hi/lo split -> DEFAULT-precision MXU passes instead of HIGHEST.
    f_hi = flat.astype(jnp.bfloat16)

    # Per-row "positive id": same sample (SimCLR) or same label (SupCon).  Labels
    # are remapped to canonical non-negative ids so the -1 padding sentinel is safe
    # even for datasets that use negative labels.
    if labels is None:
        sid_base = jnp.arange(n, dtype=jnp.int32)
    else:
        lab = jnp.asarray(labels).reshape(-1)
        sid_base = jnp.searchsorted(jnp.sort(lab), lab).astype(jnp.int32)
    sid = jnp.repeat(sid_base, v)                          # (M,), sample-major
    sid = jnp.pad(sid, (0, m_pad - m), constant_values=-1)
    sid_rows = sid.reshape(m_pad, 1)
    sid_cols = sid.reshape(1, m_pad)

    anchor_spec = pl.BlockSpec((tm, d), lambda i, j: (i, 0))
    contrast_spec = pl.BlockSpec((tn, d), lambda i, j: (j, 0))
    row_id_spec = pl.BlockSpec((tm, 1), lambda i, j: (i, 0))
    col_id_spec = pl.BlockSpec((1, tn), lambda i, j: (0, j))
    if mxu_passes >= 2:
        f_lo = (flat - f_hi.astype(jnp.float32)).astype(jnp.bfloat16)
        in_arrays = (f_hi, f_lo, f_hi, f_lo, sid_rows, sid_cols)
        in_specs = [anchor_spec, anchor_spec, contrast_spec, contrast_spec,
                    row_id_spec, col_id_spec]
    else:
        in_arrays = (f_hi, f_hi, sid_rows, sid_cols)
        in_specs = [anchor_spec, contrast_spec, row_id_spec, col_id_spec]

    grid = (m_pad // tm, m_pad // tn)
    kernel = functools.partial(_supcon_kernel, m_total=m, m_pad=m_pad,
                               tm=tm, tn=tn, mxu_passes=mxu_passes)

    # Explicit VMEM budget (v7x: 64 MiB physical; v5e: 16 MiB default scoped limit)
    # plus an advisory cost estimate for the surrounding XLA schedule.
    vmem_limit = int(min(64 << 20,
                         max(32 << 20, _block_cost_bytes(tm, tn, d) + (8 << 20))))
    feat_stream = (2 if mxu_passes >= 2 else 1) * 2 * m_pad * d
    cost = pl.CostEstimate(
        flops=int(2 * mxu_passes * m_pad * m_pad * d),
        transcendentals=int(m_pad * m_pad),
        bytes_accessed=int((m_pad // tm) * feat_stream + feat_stream + 8 * m_pad))

    loss_rows, coef_rows = pl.pallas_call(
        kernel,
        grid=grid,
        in_specs=in_specs,
        out_specs=[
            pl.BlockSpec((tm, 1), lambda i, j: (i, 0)),
            pl.BlockSpec((tm, 1), lambda i, j: (i, 0)),
        ],
        out_shape=[
            jax.ShapeDtypeStruct((m_pad, 1), jnp.float32),
            jax.ShapeDtypeStruct((m_pad, 1), jnp.float32),
        ],
        scratch_shapes=[pltpu.VMEM((tm, 1), jnp.float32)] * 4,
        compiler_params=pltpu.CompilerParams(
            dimension_semantics=("parallel", "arbitrary"),
            vmem_limit_bytes=vmem_limit),
        cost_estimate=cost,
    )(*in_arrays)

    per_row_loss = loss_rows[:m, 0]
    per_row_coef = coef_rows[:m, 0]
    loss = per_row_loss.reshape(n, v).T                 # (V, N), torch layout
    coef = per_row_coef.reshape(n, v).T
    return loss, coef


def _reference(features, labels=None, temperature=0.07):
    """Pure-JAX mirror of the PyTorch forward (contrast_mode='all')."""
    n, v = features.shape[0], features.shape[1]
    feats = features.reshape(n, v, -1).astype(jnp.float32)
    d = feats.shape[-1]
    contrast = jnp.transpose(feats, (1, 0, 2)).reshape(v * n, d)  # view-major
    if labels is None:
        base = jnp.eye(n, dtype=jnp.float32)
    else:
        lab = labels.reshape(-1, 1)
        base = (lab == lab.T).astype(jnp.float32)
    logits = jnp.dot(contrast, contrast.T,
                     precision=jax.lax.Precision.HIGHEST) / temperature
    logits = logits - jnp.max(logits, axis=1, keepdims=True)
    mm = v * n
    mask = jnp.tile(base, (v, v))
    logits_mask = 1.0 - jnp.eye(mm, dtype=jnp.float32)
    mask = mask * logits_mask
    exp_logits = jnp.exp(logits) * logits_mask
    log_prob = logits - jnp.log(jnp.sum(exp_logits, axis=1, keepdims=True))
    mean_log_prob_pos = jnp.sum(mask * log_prob, axis=1) / jnp.sum(mask, axis=1)
    loss = (-mean_log_prob_pos).reshape(v, n)
    return loss, jnp.exp(0.1 * loss)


if __name__ == "__main__":
    key = jax.random.PRNGKey(0)
    k1, k2 = jax.random.split(key, 2)

    # 1) SimCLR path, small shape with trailing spatial dims: (bsz=8, views=2, 4, 8).
    feats = jax.random.normal(k1, (8, 2, 4, 8), dtype=jnp.float32)
    fl = feats.reshape(8, 2, -1)
    feats = (fl / jnp.linalg.norm(fl, axis=-1, keepdims=True)).reshape(8, 2, 4, 8)

    loss0, coef0 = boosted_loss(feats)
    loss0, coef0 = jax.block_until_ready(loss0), jax.block_until_ready(coef0)
    rl0, rc0 = _reference(feats)
    assert loss0.shape == (2, 8) and coef0.shape == (2, 8)
    assert jnp.allclose(loss0, rl0, atol=5e-3, rtol=5e-3), (loss0, rl0)
    assert jnp.allclose(coef0, rc0, atol=5e-3, rtol=5e-3), (coef0, rc0)

    # 2) Supervised path (labels).
    labels = jnp.array([0, 1, 0, 2, 1, 3, 2, 0], dtype=jnp.int32)
    loss1, coef1 = boosted_loss(feats, labels=labels)
    loss1, coef1 = jax.block_until_ready(loss1), jax.block_until_ready(coef1)
    rl1, rc1 = _reference(feats, labels=labels)
    assert jnp.allclose(loss1, rl1, atol=5e-3, rtol=5e-3), (loss1, rl1)
    assert jnp.allclose(coef1, rc1, atol=5e-3, rtol=5e-3), (coef1, rc1)

    # 3) Streaming path (exercises column tiling, padding, and the gated
    #    diagonal / padded-column masking): M = 1200 > 1024.
    featsL = jax.random.normal(k2, (600, 2, 64), dtype=jnp.float32)
    featsL = featsL / jnp.linalg.norm(featsL, axis=-1, keepdims=True)
    loss2, coef2 = boosted_loss(featsL)
    loss2, coef2 = jax.block_until_ready(loss2), jax.block_until_ready(coef2)
    rl2, rc2 = _reference(featsL)
    assert jnp.allclose(loss2, rl2, atol=1e-2, rtol=1e-2), (loss2, rl2)
    assert jnp.allclose(coef2, rc2, atol=1e-2, rtol=1e-2), (coef2, rc2)

    print("KERNEL_OK")
</pallas_src>

<mosaic_0001>
module attributes {stable_mosaic.version = 11 : i64} {
  func.func @_supcon_kernel(%arg0: i32, %arg1: i32, %arg2: memref<8x32xbf16, #tpu.memory_space<vmem>>, %arg3: memref<8x32xbf16, #tpu.memory_space<vmem>>, %arg4: memref<16x32xbf16, #tpu.memory_space<vmem>>, %arg5: memref<16x32xbf16, #tpu.memory_space<vmem>>, %arg6: memref<8x1xi32, #tpu.memory_space<vmem>>, %arg7: memref<1x16xi32, #tpu.memory_space<vmem>>, %arg8: memref<8x1xf32, #tpu.memory_space<vmem>>, %arg9: memref<8x1xf32, #tpu.memory_space<vmem>>, %arg10: memref<8x1xf32, #tpu.memory_space<vmem>>, %arg11: memref<8x1xf32, #tpu.memory_space<vmem>>, %arg12: memref<8x1xf32, #tpu.memory_space<vmem>>, %arg13: memref<8x1xf32, #tpu.memory_space<vmem>>) attributes {dimension_semantics = [#tpu.dimension_semantics<parallel>, #tpu.dimension_semantics<arbitrary>], iteration_bounds = array<i64: 2, 1>, scalar_prefetch = 0 : i64, scratch_operands = 4 : i64, tpu.core_type = #tpu.core_type<tc>, window_params = [{transform_indices = @transform_0, window_bounds = array<i64: 8, 32>}, {transform_indices = @transform_1, window_bounds = array<i64: 8, 32>}, {transform_indices = @transform_2, window_bounds = array<i64: 16, 32>}, {transform_indices = @transform_3, window_bounds = array<i64: 16, 32>}, {transform_indices = @transform_4, window_bounds = array<i64: 8, 1>}, {transform_indices = @transform_5, window_bounds = array<i64: 1, 16>}, {transform_indices = @transform_6, window_bounds = array<i64: 8, 1>}, {transform_indices = @transform_7, window_bounds = array<i64: 8, 1>}]} {
    %cst = arith.constant -3.000000e+38 : f32
    %0 = vector.broadcast %cst : f32 to vector<8x1xf32>
    %c0 = arith.constant 0 : index
    %c0_0 = arith.constant 0 : index
    %1 = vector.load %arg10[%c0, %c0_0] : memref<8x1xf32, #tpu.memory_space<vmem>>, vector<8x1xf32>
    tpu.vector_store %arg10[%c0, %c0_0], %0 {strides = array<i32>} : memref<8x1xf32, #tpu.memory_space<vmem>>, vector<8x1xf32>,
    %cst_1 = arith.constant 0.000000e+00 : f32
    %2 = vector.broadcast %cst_1 : f32 to vector<8x1xf32>
    %c0_2 = arith.constant 0 : index
    %c0_3 = arith.constant 0 : index
    %3 = vector.load %arg11[%c0_2, %c0_3] : memref<8x1xf32, #tpu.memory_space<vmem>>, vector<8x1xf32>
    tpu.vector_store %arg11[%c0_2, %c0_3], %2 {strides = array<i32>} : memref<8x1xf32, #tpu.memory_space<vmem>>, vector<8x1xf32>,
    %cst_4 = arith.constant 0.000000e+00 : f32
    %4 = vector.broadcast %cst_4 : f32 to vector<8x1xf32>
    %c0_5 = arith.constant 0 : index
    %c0_6 = arith.constant 0 : index
    %5 = vector.load %arg12[%c0_5, %c0_6] : memref<8x1xf32, #tpu.memory_space<vmem>>, vector<8x1xf32>
    tpu.vector_store %arg12[%c0_5, %c0_6], %4 {strides = array<i32>} : memref<8x1xf32, #tpu.memory_space<vmem>>, vector<8x1xf32>,
    %cst_7 = arith.constant 0.000000e+00 : f32
    %6 = vector.broadcast %cst_7 : f32 to vector<8x1xf32>
    %c0_8 = arith.constant 0 : index
    %c0_9 = arith.constant 0 : index
    %7 = vector.load %arg13[%c0_8, %c0_9] : memref<8x1xf32, #tpu.memory_space<vmem>>, vector<8x1xf32>
    tpu.vector_store %arg13[%c0_8, %c0_9], %6 {strides = array<i32>} : memref<8x1xf32, #tpu.memory_space<vmem>>, vector<8x1xf32>,
    %c0_10 = arith.constant 0 : index
    %c0_11 = arith.constant 0 : index
    %8 = vector.load %arg2[%c0_10, %c0_11] : memref<8x32xbf16, #tpu.memory_space<vmem>>, vector<8x32xbf16>
    %c0_12 = arith.constant 0 : index
    %c0_13 = arith.constant 0 : index
    %9 = vector.load %arg4[%c0_12, %c0_13] : memref<16x32xbf16, #tpu.memory_space<vmem>>, vector<16x32xbf16>
    %cst_14 = arith.constant dense<0.000000e+00> : vector<8x16xf32>
    %10 = tpu.matmul %8, %9, %cst_14 {dimension_numbers = #tpu.dot_dimension_numbers<[1], [1], [0], [0], [0, 0, 1, 0], [], []>} : vector<8x32xbf16>, vector<16x32xbf16>, vector<8x16xf32> -> vector<8x16xf32>
    %c0_15 = arith.constant 0 : index
    %c0_16 = arith.constant 0 : index
    %11 = vector.load %arg2[%c0_15, %c0_16] : memref<8x32xbf16, #tpu.memory_space<vmem>>, vector<8x32xbf16>
    %c0_17 = arith.constant 0 : index
    %c0_18 = arith.constant 0 : index
    %12 = vector.load %arg5[%c0_17, %c0_18] : memref<16x32xbf16, #tpu.memory_space<vmem>>, vector<16x32xbf16>
    %cst_19 = arith.constant dense<0.000000e+00> : vector<8x16xf32>
    %13 = tpu.matmul %11, %12, %cst_19 {dimension_numbers = #tpu.dot_dimension_numbers<[1], [1], [0], [0], [0, 0, 1, 0], [], []>} : vector<8x32xbf16>, vector<16x32xbf16>, vector<8x16xf32> -> vector<8x16xf32>
    %14 = arith.addf %10, %13 : vector<8x16xf32>
    %c0_20 = arith.constant 0 : index
    %c0_21 = arith.constant 0 : index
    %15 = vector.load %arg3[%c0_20, %c0_21] : memref<8x32xbf16, #tpu.memory_space<vmem>>, vector<8x32xbf16>
    %c0_22 = arith.constant 0 : index
    %c0_23 = arith.constant 0 : index
    %16 = vector.load %arg4[%c0_22, %c0_23] : memref<16x32xbf16, #tpu.memory_space<vmem>>, vector<16x32xbf16>
    %cst_24 = arith.constant dense<0.000000e+00> : vector<8x16xf32>
    %17 = tpu.matmul %15, %16, %cst_24 {dimension_numbers = #tpu.dot_dimension_numbers<[1], [1], [0], [0], [0, 0, 1, 0], [], []>} : vector<8x32xbf16>, vector<16x32xbf16>, vector<8x16xf32> -> vector<8x16xf32>
    %18 = arith.addf %14, %17 : vector<8x16xf32>
    %c0_25 = arith.constant 0 : index
    %c0_26 = arith.constant 0 : index
    %19 = vector.load %arg10[%c0_25, %c0_26] : memref<8x1xf32, #tpu.memory_space<vmem>>, vector<8x1xf32>
    %c8_i32 = arith.constant 8 : i32
    %20 = arith.muli %arg0, %c8_i32 : i32
    %21 = tpu.iota {dimensions = array<i32: 0>} : vector<8x16xi32>
    %22 = vector.broadcast %20 : i32 to vector<8x16xi32>
    %23 = arith.addi %22, %21 : vector<8x16xi32>
    %c16_i32 = arith.constant 16 : i32
    %24 = arith.muli %arg1, %c16_i32 : i32
    %25 = tpu.iota {dimensions = array<i32: 1>} : vector<8x16xi32>
    %26 = vector.broadcast %24 : i32 to vector<8x16xi32>
    %27 = arith.addi %26, %25 : vector<8x16xi32>
    %28 = arith.cmpi ne, %23, %27 : vector<8x16xi32>
    %c0_27 = arith.constant 0 : index
    %c0_28 = arith.constant 0 : index
    %29 = vector.load %arg6[%c0_27, %c0_28] : memref<8x1xi32, #tpu.memory_space<vmem>>, vector<8x1xi32>
    %c0_29 = arith.constant 0 : index
    %c0_30 = arith.constant 0 : index
    %30 = vector.load %arg7[%c0_29, %c0_30] : memref<1x16xi32, #tpu.memory_space<vmem>>, vector<1x16xi32>
    %31 = vector.broadcast %29 : vector<8x1xi32> to vector<8x16xi32>
    %32 = vector.broadcast %30 : vector<1x16xi32> to vector<8x16xi32>
    %33 = arith.cmpi eq, %31, %32 : vector<8x16xi32>
    %34 = arith.andi %33, %28 : vector<8x16xi1>
    %cst_31 = arith.constant dense<0xFF800000> : vector<8xf32>
    %35 = vector.multi_reduction <maximumf>, %18, %cst_31 [1] : vector<8x16xf32> to vector<8xf32>
    %36 = vector.shape_cast %35 : vector<8xf32> to vector<8x1xf32>
    %37 = arith.maximumf %19, %36 : vector<8x1xf32>
    %cst_32 = arith.constant -3.000000e+38 : f32
    %38 = vector.broadcast %cst_32 : f32 to vector<8x16xf32>
    %39 = arith.select %28, %18, %38 : vector<8x16xi1>, vector<8x16xf32>
    %40 = vector.broadcast %37 : vector<8x1xf32> to vector<8x16xf32>
    %41 = arith.subf %39, %40 : vector<8x16xf32>
    %42 = math.exp %41 : vector<8x16xf32>
    %cst_33 = arith.constant dense<0.000000e+00> : vector<8xf32>
    %43 = vector.multi_reduction <add>, %42, %cst_33 [1] : vector<8x16xf32> to vector<8xf32>
    %44 = vector.shape_cast %43 : vector<8xf32> to vector<8x1xf32>
    %cst_34 = arith.constant 0.000000e+00 : f32
    %45 = vector.broadcast %cst_34 : f32 to vector<8x16xf32>
    %46 = arith.select %34, %18, %45 : vector<8x16xi1>, vector<8x16xf32>
    %cst_35 = arith.constant dense<0.000000e+00> : vector<8xf32>
    %47 = vector.multi_reduction <add>, %46, %cst_35 [1] : vector<8x16xf32> to vector<8xf32>
    %48 = vector.shape_cast %47 : vector<8xf32> to vector<8x1xf32>
    %49 = arith.extui %34 : vector<8x16xi1> to vector<8x16xi32>
    %50 = arith.sitofp %49 : vector<8x16xi32> to vector<8x16xf32>
    %cst_36 = arith.constant dense<0.000000e+00> : vector<8xf32>
    %51 = vector.multi_reduction <add>, %50, %cst_36 [1] : vector<8x16xf32> to vector<8xf32>
    %52 = vector.shape_cast %51 : vector<8xf32> to vector<8x1xf32>
    %53 = arith.subf %19, %37 : vector<8x1xf32>
    %54 = math.exp %53 : vector<8x1xf32>
    %c0_37 = arith.constant 0 : index
    %c0_38 = arith.constant 0 : index
    %55 = vector.load %arg11[%c0_37, %c0_38] : memref<8x1xf32, #tpu.memory_space<vmem>>, vector<8x1xf32>
    %56 = arith.mulf %54, %55 : vector<8x1xf32>
    %57 = arith.addf %56, %44 : vector<8x1xf32>
    %c0_39 = arith.constant 0 : index
    %c0_40 = arith.constant 0 : index
    %58 = vector.load %arg11[%c0_39, %c0_40] : memref<8x1xf32, #tpu.memory_space<vmem>>, vector<8x1xf32>
    tpu.vector_store %arg11[%c0_39, %c0_40], %57 {strides = array<i32>} : memref<8x1xf32, #tpu.memory_space<vmem>>, vector<8x1xf32>,
    %c0_41 = arith.constant 0 : index
    %c0_42 = arith.constant 0 : index
    %59 = vector.load %arg12[%c0_41, %c0_42] : memref<8x1xf32, #tpu.memory_space<vmem>>, vector<8x1xf32>
    %60 = arith.addf %59, %48 : vector<8x1xf32>
    %c0_43 = arith.constant 0 : index
    %c0_44 = arith.constant 0 : index
    %61 = vector.load %arg12[%c0_43, %c0_44] : memref<8x1xf32, #tpu.memory_space<vmem>>, vector<8x1xf32>
    tpu.vector_store %arg12[%c0_43, %c0_44], %60 {strides = array<i32>} : memref<8x1xf32, #tpu.memory_space<vmem>>, vector<8x1xf32>,
    %c0_45 = arith.constant 0 : index
    %c0_46 = arith.constant 0 : index
    %62 = vector.load %arg13[%c0_45, %c0_46] : memref<8x1xf32, #tpu.memory_space<vmem>>, vector<8x1xf32>
    %63 = arith.addf %62, %52 : vector<8x1xf32>
    %c0_47 = arith.constant 0 : index
    %c0_48 = arith.constant 0 : index
    %64 = vector.load %arg13[%c0_47, %c0_48] : memref<8x1xf32, #tpu.memory_space<vmem>>, vector<8x1xf32>
    tpu.vector_store %arg13[%c0_47, %c0_48], %63 {strides = array<i32>} : memref<8x1xf32, #tpu.memory_space<vmem>>, vector<8x1xf32>,
    %c0_49 = arith.constant 0 : index
    %c0_50 = arith.constant 0 : index
    %65 = vector.load %arg10[%c0_49, %c0_50] : memref<8x1xf32, #tpu.memory_space<vmem>>, vector<8x1xf32>
    tpu.vector_store %arg10[%c0_49, %c0_50], %37 {strides = array<i32>} : memref<8x1xf32, #tpu.memory_space<vmem>>, vector<8x1xf32>,
    %c0_51 = arith.constant 0 : index
    %c0_52 = arith.constant 0 : index
    %66 = vector.load %arg13[%c0_51, %c0_52] : memref<8x1xf32, #tpu.memory_space<vmem>>, vector<8x1xf32>
    %cst_53 = arith.constant 0.000000e+00 : f32
    %67 = vector.broadcast %cst_53 : f32 to vector<8x1xf32>
    %68 = arith.cmpf ogt, %66, %67 : vector<8x1xf32>
    %c0_54 = arith.constant 0 : index
    %c0_55 = arith.constant 0 : index
    %69 = vector.load %arg12[%c0_54, %c0_55] : memref<8x1xf32, #tpu.memory_space<vmem>>, vector<8x1xf32>
    %cst_56 = arith.constant 1.000000e+00 : f32
    %70 = vector.broadcast %cst_56 : f32 to vector<8x1xf32>
    %71 = arith.maximumf %66, %70 : vector<8x1xf32>
    %72 = arith.divf %69, %71 : vector<8x1xf32>
    %cst_57 = arith.constant 0.000000e+00 : f32
    %73 = vector.broadcast %cst_57 : f32 to vector<8x1xf32>
    %74 = arith.select %68, %72, %73 : vector<8x1xi1>, vector<8x1xf32>
    %c0_58 = arith.constant 0 : index
    %c0_59 = arith.constant 0 : index
    %75 = vector.load %arg11[%c0_58, %c0_59] : memref<8x1xf32, #tpu.memory_space<vmem>>, vector<8x1xf32>
    %76 = math.log %75 : vector<8x1xf32>
    %c0_60 = arith.constant 0 : index
    %c0_61 = arith.constant 0 : index
    %77 = vector.load %arg10[%c0_60, %c0_61] : memref<8x1xf32, #tpu.memory_space<vmem>>, vector<8x1xf32>
    %78 = arith.addf %76, %77 : vector<8x1xf32>
    %79 = arith.subf %78, %74 : vector<8x1xf32>
    %c0_62 = arith.constant 0 : index
    %c0_63 = arith.constant 0 : index
    %80 = vector.load %arg8[%c0_62, %c0_63] : memref<8x1xf32, #tpu.memory_space<vmem>>, vector<8x1xf32>
    tpu.vector_store %arg8[%c0_62, %c0_63], %79 {strides = array<i32>} : memref<8x1xf32, #tpu.memory_space<vmem>>, vector<8x1xf32>,
    %cst_64 = arith.constant 1.000000e-01 : f32
    %81 = vector.broadcast %cst_64 : f32 to vector<8x1xf32>
    %82 = arith.mulf %81, %79 : vector<8x1xf32>
    %83 = math.exp %82 : vector<8x1xf32>
    %c0_65 = arith.constant 0 : index
    %c0_66 = arith.constant 0 : index
    %84 = vector.load %arg9[%c0_65, %c0_66] : memref<8x1xf32, #tpu.memory_space<vmem>>, vector<8x1xf32>
    tpu.vector_store %arg9[%c0_65, %c0_66], %83 {strides = array<i32>} : memref<8x1xf32, #tpu.memory_space<vmem>>, vector<8x1xf32>,
    return
  }
  func.func @transform_0(%arg0: i32, %arg1: i32) -> (i32, i32) {
    %c0_i32 = arith.constant 0 : i32
    %c0_i32_0 = arith.constant 0 : i32
    return %arg0, %c0_i32 : i32, i32
  }
  func.func @transform_1(%arg0: i32, %arg1: i32) -> (i32, i32) {
    %c0_i32 = arith.constant 0 : i32
    %c0_i32_0 = arith.constant 0 : i32
    return %arg0, %c0_i32 : i32, i32
  }
  func.func @transform_2(%arg0: i32, %arg1: i32) -> (i32, i32) {
    %c0_i32 = arith.constant 0 : i32
    %c0_i32_0 = arith.constant 0 : i32
    return %arg1, %c0_i32 : i32, i32
  }
  func.func @transform_3(%arg0: i32, %arg1: i32) -> (i32, i32) {
    %c0_i32 = arith.constant 0 : i32
    %c0_i32_0 = arith.constant 0 : i32
    return %arg1, %c0_i32 : i32, i32
  }
  func.func @transform_4(%arg0: i32, %arg1: i32) -> (i32, i32) {
    %c0_i32 = arith.constant 0 : i32
    %c0_i32_0 = arith.constant 0 : i32
    return %arg0, %c0_i32 : i32, i32
  }
  func.func @transform_5(%arg0: i32, %arg1: i32) -> (i32, i32) {
    %c0_i32 = arith.constant 0 : i32
    %c0_i32_0 = arith.constant 0 : i32
    return %c0_i32, %arg1 : i32, i32
  }
  func.func @transform_6(%arg0: i32, %arg1: i32) -> (i32, i32) {
    %c0_i32 = arith.constant 0 : i32
    %c0_i32_0 = arith.constant 0 : i32
    return %arg0, %c0_i32 : i32, i32
  }
  func.func @transform_7(%arg0: i32, %arg1: i32) -> (i32, i32) {
    %c0_i32 = arith.constant 0 : i32
    %c0_i32_0 = arith.constant 0 : i32
    return %arg0, %c0_i32 : i32, i32
  }
}

</mosaic_0001>

<bundles_post_ra>
// kernel: tpu_custom_call.1
= control target key start
LH: loop header
LB: loop body
LE: loop exit
PB: predicated region body
PF: predicated region fallthrough
CT: control target
= control target key end

     0   :  { %13 = vsyncpa [#allocation7], 0  ;;  %s1054_s0 = inlined_call_operand.vmem [shape: bf16[16,32], index: 0, kind: input, shape index: {}]   ;;  %s1055_s1 = inlined_call_operand.vmem [shape: bf16[16,32], index: 1, kind: input, shape index: {}]   ;;  %s1056_s2 = inlined_call_operand.hbm [shape: bf16[16,32], index: 2, kind: input, shape index: {}]   ;;  %s1057_s3 = inlined_call_operand.hbm [shape: bf16[16,32], index: 3, kind: input, shape index: {}]   ;;  %s1058_s4 = inlined_call_operand.vmem [shape: s32[16,1], index: 4, kind: input, shape index: {}]   ;;  %s1059_s5 = inlined_call_operand.vmem [shape: s32[1,16], index: 5, kind: input, shape index: {}]   ;;  %s1060_s6 = inlined_call_operand.vmem [shape: f32[16,1], index: 6, kind: output, shape index: {0}]   ;;  %s1061_s7 = inlined_call_operand.vmem [shape: f32[16,1], index: 7, kind: output, shape index: {1}]  }
   0x1   :  { %14 = vsyncpa [#allocation9], 0  ;;  %s952_s24 = smov 0   ;;  %s954_s25 = smov 0  }
   0x2   :  { %s956_s26 = smov 0  }
   0x3 LB: > { %s718_s27 = sadd.s32 4294967295, %s903_s26   ;;  %s32_s28 = sadd.s32 1, %s899_s25  ;;  %s903_s26 = sphi %s956_s26, %s20_s26   ;;  %s899_s25 = sphi %s954_s25, %s1065_s25   ;;  %s895_s24 = sphi %s952_s24, %s1064_s24  }
   0x4   : > { %p34_p0 = scmp.ge.s32.totalorder %s32_s28, 2  ;;  %p720_p1 = scmp.ge.s32.totalorder %s903_s26, 1 }
   0x5   : > { %p245_p2 = scmp.lt.s32.totalorder %s903_s26, 3  ;;  %p977_p4 = scmp.eq.s32.totalorder %s718_s27, 0 }
   0x6   : > { %s1067_s28 = smov (%p34_p0, %s32_s28), 0  ;;  %s259_s10 = sshll.u32 %s1056_s2, 4  ;;  %s260_s10 = int_to_ptr.hbm [resolvable:$true] %s259_s10 }
   0x7   : > { %p973_p3 = pnand %p720_p1, %p245_p2  ;;  %s905_s11 = smov [#allocation6]  }
   0x8   : > { %s261_s12 = sshll.u32 %s905_s11, 4  ;;  %s276_s15 = sshll.u32 %s1057_s3, 4  ;;  %s262_s12 = int_to_ptr.vmem [resolvable:$true] %s261_s12  ;;  %s277_s15 = int_to_ptr.hbm [resolvable:$true] %s276_s15 }
   0x9   : > { %p758_p5 = pneg %p973_p3  ;;  %s906_s16 = smov 64  }
   0xa   : > { %s907_s17 = smov 4   ;;  %s908_s18 = smov [#allocation8]  }
   0xb   : > { %p759_p6 = pnand %p977_p4, %p758_p5  ;;  %s278_s19 = sshll.u32 %s908_s18, 4  ;;  %s279_s19 = int_to_ptr.vmem [resolvable:$true] %s278_s19 }
   0xc   : > { %321 = sbr.rel (%p973_p3) target bundleno = 561 (0x231), region = 44 }
   0xd   : > { %761 = dma.hbm_to_vmem [thread:$0]  (!%p759_p6), %s260_s10, 128, %s262_s12, [#allocation7], %s906_s16, %s906_s16, %s907_s17  }
   0xe   : > { %764 = dma.hbm_to_vmem [thread:$0]  (!%p759_p6), %s277_s15, 128, %s279_s19, [#allocation9], %s906_s16, %s906_s16, %s907_s17  }
  0x11   : > { %886 = dma.done.wait (%p977_p4), [#allocation7], 128  }
  0x12   : > { %888 = vsyncadd (%p977_p4), [#allocation7], 4294967168 }
  0x13   : > { %890 = dma.done.wait (%p977_p4), [#allocation9], 128  }
  0x14   : > { %892 = vsyncadd (%p977_p4), [#allocation9], 4294967168  ;;  %p372_p7 = scmp.lt.s32.totalorder %s895_s24, 1  ;;  %vm413_vm0 = vcmask 261120   ;;  %v749_v0 = vld [vmem:[#allocation8] sm:$0xff]  ;;  %v748_v1 = vld [vmem:[#allocation6] sm:$0xff]  ;;  %v474_v23 = vlaneseq }
  0x15   : > { %v418_v2 = vsel %vm413_vm0, %v749_v0, 0  ;;  %v439_v3 = vsel %vm413_vm0, %v748_v1, 0  ;;  %v909_v6 = vmov 0   ;;  %vm398_vm1 = vcmask 7168   ;;  %s744_s13 = sshll.u32 %s895_s24, 3 }
  0x16   : > { %s1003_s20 = scalar_select %p372_p7, %s895_s24, 1  ;;  %427 = vmatpush.bf16.xpose.msra.mxu0 %v418_v2  ;;  %448 = vmatpush.bf16.xpose.msra.mxu1 %v439_v3  ;;  %v910_v9 = vmov -3e+38   ;;  %vm492_vm2 = vcmask 130048   ;;  %v911_v18 = vmov 0.0   ;;  %v475_v24 = vshrl.u32 %v474_v23, 7 }
  0x17   : > { %465 = vmatpush.bf16.xpose.msra.mxu2 %v439_v3  ;;  %800 = vset.pattern.permute.xlu0 %v909_v6  ;;  %399 = vst.msk [vmem:[#allocation2] sm:$0xff] %vm398_vm1, %v910_v9  ;;  %v476_v25 = vstv %s744_s13  ;;  %v802_v26 = vld [vmem:[%s1059_s5] ss:$0 sm:$0xff]  ;;  %v480_v29 = vand.u32 127, %v474_v23 }
  0x18   : > { %s728_s21 = sshll.u32 %s1003_s20, 2  ;;  %801 = vset.pattern.permute.xlu1 %v909_v6  ;;  %s1015_s9 = sshll.u32 %s1003_s20, 3  ;;  %400 = vst.msk [vmem:[#allocation3] sm:$0xff] %vm398_vm1, %v911_v18  ;;  %v477_v28 = vadd.s32 %v476_v25, %v475_v24 }
  0x19   : > { %s375_s27 = scalar_lea.vmem %s1054_s0, %s728_s21  ;;  %s379_s8 = scalar_lea.vmem %s1055_s1, %s728_s21  ;;  %401 = vst.msk [vmem:[#allocation4] sm:$0xff] %vm398_vm1, %v911_v18 }
  0x1a   : > { %v403_v4 = vld [vmem:[%s375_s27] sm:$0xf]  ;;  %s385_s12 = scalar_lea.vmem %s1058_s4, %s1015_s9  ;;  %402 = vst.msk [vmem:[#allocation5] sm:$0xff] %vm398_vm1, %v911_v18  ;;  %vm483_vm4 = vcmp.ne.s32.totalorder %v477_v28, %v480_v29  ;;  %s392_s17 = scalar_lea.vmem %s1060_s6, %s1015_s9 }
  0x1b   : > { %v454_v5 = vld [vmem:[%s379_s8] sm:$0xf]  ;;  %s396_s20 = scalar_lea.vmem %s1061_s7, %s1015_s9 }
  0x1c   : > { %v484_v17 = vld [vmem:[%s385_s12] sm:$0xff] }
  0x1d   : > { %737 = vmatmul.msk.bf16.vlgmr.msra.gmra.mxu0 %vm413_vm0, %v403_v4  ;;  %742 = vmatmul.msk.bf16.vlgmr.msra.gmra.mxu1 %vm413_vm0, %v403_v4 }
  0x1e   : > { %743 = vmatmul.msk.bf16.vlgmr.msra.gmra.mxu2 %vm413_vm0, %v454_v5  ;;  %v472_v19 = vld [vmem:[#allocation2] sm:$0xff] }
  0x1f   : > { %v521_v48 = vld [vmem:[#allocation3] sm:$0xff] }
  0x20   : > { %v525_v54 = vld [vmem:[#allocation4] sm:$0xff] }
  0x21   : > { %v528_v40 = vld [vmem:[#allocation5] sm:$0xff] }
  0x9a   : > { %v429_v7 = vpop.f32.mrf.mxu0  ;;  %v450_v8 = vpop.f32.mrf.mxu1 }
  0x9b   : > { %v451_v10 = vadd.f32 %v450_v8, %v429_v7 }
  0xa1   : > { %v467_v11 = vpop.f32.mrf.mxu2 }
  0xa2   : > { %v471_v12 = vadd.f32 %v467_v11, %v451_v10  ;;  %v431_v13 = vpop.f32.mrf.mxu0  ;;  %v452_v14 = vpop.f32.mrf.mxu1 }
  0xa4   : > { %v493_v15 = vsel %vm492_vm2, %v471_v12, -inf  ;;  %v497_v32 = vsel %vm483_vm4, %v471_v12, -3e+38 }
  0xa5   : > { %494 = vmax.xlane.f32.xlu0 %v493_v15 }
  0xa9   : > { %v469_v16 = vpop.f32.mrf.mxu2 }
  0xb9   : > { %487 = vperm.xlu0 %800, %v484_v17  }
 0x118   : > { %v495_v20 = vpop.xlane.xlu0 %494 }
 0x119   : > { %v496_v21 = vmax.f32 %v472_v19, %v495_v20 }
 0x11b   : > { %v518_v22 = vsub.f32 %v472_v19, %v496_v21  ;;  %531 = vst.msk [vmem:[#allocation2] sm:$0xff] %vm398_vm1, %v496_v21  ;;  %500 = vperm.xlu1 %801, %v496_v21  }
 0x11d   : > { %v519_v44 = vmul.f32 1.442695, %v518_v22 }
 0x122   : > { %v555_v4 = vld [vmem:[#allocation2] sm:$0xff] }
 0x12b   : > { %v488_v27 = vpop.permute.xlu0 %487 }
 0x12c   : > { %vm490_vm3 = vcmp.eq.s32.totalorder %v488_v27, %v802_v26 }
 0x12d   : > { %vm491_vm5 = vmand %vm490_vm3, %vm483_vm4 }
 0x12e   : > { %v745_v30 = vsel %vm491_vm5, 1.0, %v911_v18  ;;  %v509_v38 = vsel %vm491_vm5, %v471_v12, 0.0 }
 0x12f   : > { %v515_v31 = vsel %vm492_vm2, %v745_v30, 0.0  ;;  %v510_v39 = vsel %vm492_vm2, %v509_v38, 0.0 }
 0x145   : > { %516 = vadd.xlane.f32.xlu1 %v515_v31 }
 0x18d   : > { %v501_v33 = vpop.permute.xlu1 %500 }
 0x18e   : > { %v503_v34 = vsub.f32 %v497_v32, %v501_v33 }
 0x190   : > { %v504_v35 = vmul.f32 1.442695, %v503_v34 }
 0x192   : > { %803 = vpow2.f32 %v504_v35 }
 0x193   : > { %805 = vpow2.f32 %v519_v44 }
 0x198   : > { %v804_v36 = vpop.eup %803 }
 0x199   : > { %v506_v37 = vsel %vm492_vm2, %v804_v36, 0.0  ;;  %v806_v46 = vpop.eup %805 }
 0x19a   : > { %507 = vadd.xlane.f32.xlu2 %v506_v37  ;;  %v522_v49 = vmul.f32 %v806_v46, %v521_v48 }
 0x1a2   : > { %511 = vadd.xlane.f32.xlu2 %v510_v39 }
 0x1b8   : > { %v517_v41 = vpop.xlane.xlu1 %516 }
 0x1b9   : > { %v529_v42 = vadd.f32 %v528_v40, %v517_v41 }
 0x1bb   : > { %530 = vst.msk [vmem:[#allocation5] sm:$0xff] %vm398_vm1, %v529_v42 }
 0x1c2   : > { %v532_v43 = vld [vmem:[#allocation5] sm:$0xff] }
 0x1c3   : > { %v535_v45 = vmax.f32 %v532_v43, 1.0  ;;  %vm533_vm10 = vcmp.gt.f32.partialorder %v532_v43, 0.0 }
 0x1c5   : > { %807 = vrcp.f32 %v535_v45  ;;  %vm541_vm6 = vweird.f32 %v535_v45  ;;  %v547_v59 = vand.u32 2147483648, %v535_v45  ;;  %v545_v61 = vand.u32 2147483647, %v535_v45 }
 0x1c7   : > { %v548_v62 = vor.u32 1.1754944e-38, %v547_v59  ;;  %vm546_vm9 = vcmp.eq.f32.partialorder %v545_v61, 8.507059e+37 }
 0x1cb   : > { %v808_v47 = vpop.eup %807 }
 0x1cc   : > { %v537_v50 = vmul.f32 %v808_v47, %v535_v45  ;;  %vm542_vm7 = vweird.f32 %v808_v47 }
 0x1cd   : > { %vm543_vm8 = vmor %vm541_vm6, %vm542_vm7 }
 0x1ce   : > { %v538_v53 = vsub.f32 1.0, %v537_v50 }
 0x1d0   : > { %v539_v55 = vmul.f32 %v808_v47, %v538_v53 }
 0x1d2   : > { %v540_v60 = vadd.f32 %v808_v47, %v539_v55 }
 0x1d4   : > { %v544_v63 = vsel %vm543_vm8, %v808_v47, %v540_v60 }
 0x1d5   : > { %v549_v3 = vsel %vm546_vm9, %v548_v62, %v544_v63 }
 0x20d   : > { %v508_v51 = vpop.xlane.xlu2 %507 }
 0x20e   : > { %v523_v52 = vadd.f32 %v522_v49, %v508_v51 }
 0x210   : > { %524 = vst.msk [vmem:[#allocation3] sm:$0xff] %vm398_vm1, %v523_v52 }
 0x215   : > { %v512_v56 = vpop.xlane.xlu2 %511 }
 0x216   : > { %v526_v57 = vadd.f32 %v525_v54, %v512_v56 }
 0x217   : > { %v552_v58 = vld [vmem:[#allocation3] sm:$0xff] }
 0x218   : > { %809 = vlog2.f32 %v552_v58  ;;  %527 = vst.msk [vmem:[#allocation4] sm:$0xff] %vm398_vm1, %v526_v57 }
 0x21e   : > { %v810_v0 = vpop.eup %809 }
 0x21f   : > { %v554_v1 = vmul.f32 0.6931472, %v810_v0  ;;  %v534_v2 = vld [vmem:[#allocation4] sm:$0xff] }
 0x220   : > { %v550_v5 = vmul.f32 %v549_v3, %v534_v2 }
 0x221   : > { %v556_v6 = vadd.f32 %v555_v4, %v554_v1 }
 0x222   : > { %v551_v7 = vsel %vm533_vm10, %v550_v5, 0.0 }
 0x223   : > { %v557_v8 = vsub.f32 %v556_v6, %v551_v7 }
 0x225   : > { %558 = vst.msk [vmem:[%s392_s17] sm:$0xff] %vm398_vm1, %v557_v8  ;;  %v559_v9 = vmul.f32 0.1, %v557_v8 }
 0x227   : > { %v560_v10 = vmul.f32 1.442695, %v559_v9 }
 0x229   : > { %811 = vpow2.f32 %v560_v10 }
 0x22f   : > { %v812_v11 = vpop.eup %811 }
 0x230   : > { %562 = vst.msk [vmem:[%s396_s20] sm:$0xff] %vm398_vm1, %v812_v11 }
 0x231 PF: > { %s20_s26 = sadd.s32 1, %s903_s26   ;;  %s1064_s24 = smov %s899_s25 }
 0x232   : > { %p17_p8 = scmp.ge.s32.totalorder %s20_s26, 4   ;;  %s1065_s25 = smov %s1067_s28 }
 0x234   :  { %19 = sbr.rel (!%p17_p8) target bundleno = 3 (0x3), region = 106 }
 0x239   :  { %596 = vsyncpa [#allocation7], 1 }
 0x23a   :  { %598 = vsyncpa [#allocation7 + $0x1], 1 }
 0x23b   :  { %599 = vsyncpa [#allocation9], 1 }

</bundles_post_ra>
